<compile_context>
chip_gen: v5e
topology: v5e:2x2
jax: 0.10.0
libtpu: 0.0.40
codegen_flags: <defaults>
</compile_context>

<pallas_src>
import functools

import jax
import jax.numpy as jnp
import numpy as np
from jax import lax
from jax.experimental import pallas as pl
from jax.experimental.pallas import tpu as pltpu


def _round_up(x, m):
    return (x + m - 1) // m * m


# ------------------------------- Pallas kernel --------------------------------
def _optimized_block_kernel(x_ref, mask_ref, pool_ref, w1_ref, w2_ref, w3_ref,
                            bias_ref, out_ref, *, shifts, n_chunk, hw, bchunk):
    """One grid step = one chunk of `bchunk` images flattened on the lane axis.

      x_ref    : (Cin_p,  n_chunk)       f32   n_chunk = bchunk*H*W
      mask_ref : (9,      n_chunk)       bf16  border mask per 3x3 tap (zero padding)
      pool_ref : (H*W,    Hh*Wh)         bf16  per-image AvgPool2d(2) matrix (0 / 0.25)
      w1_ref   : (Cout_p, 9*Cin_p)       bf16  conv1 weights, im2col layout
      w2_ref   : (Cout_p, 9*Cout_p)      bf16  conv2 weights, im2col layout
      w3_ref   : (Cout_p, Cin_p)         bf16  conv3 (1x1) weights
      bias_ref : (2*Cout_p, 1)           f32   rows [0:Cout_p] = b1, rows [Cout_p:] = b2+b3
      out_ref  : (Cout_p, bchunk*Hh*Wh)  f32
    """
    cout_p = out_ref.shape[0]
    x = x_ref[...]                                          # f32

    def im2col(v):
        # rows [t*C : (t+1)*C] = zero-padded tap t of the 3x3 neighbourhood of v.
        rows = []
        for t, s in enumerate(shifts):
            if s == 0:                                      # centre tap: no shift/mask
                rows.append(v)
            else:
                shifted = pltpu.roll(v, shift=(-s) % n_chunk, axis=1)
                rows.append(shifted * mask_ref[t:t + 1, :])   # bf16 mask promotes to f32
        # single cast feeds the MXU in bf16; masking/rolls stay on the f32 VPU path
        return jnp.concatenate(rows, axis=0).astype(jnp.bfloat16)   # (9*C, n_chunk)

    b1 = bias_ref[0:cout_p, :]
    b23 = bias_ref[cout_p:2 * cout_p, :]

    # conv1 (3x3, pad 1) + bias + ReLU: one bf16 MXU matmul with f32 accumulation.
    h1 = jnp.dot(w1_ref[...], im2col(x), preferred_element_type=jnp.float32)
    h1 = jnp.maximum(h1 + b1, 0.0)

    # conv2 (3x3, pad 1); its bias is deferred past the pool (pool columns sum to 1).
    h2 = jnp.dot(w2_ref[...], im2col(h1), preferred_element_type=jnp.float32)

    # bypass: conv1x1 commutes with AvgPool -> fold into the SAME pooling matmul:
    #   out = pool(h2 + w3 @ x) + (b2 + b3)
    w3x = jnp.dot(w3_ref[...], x.astype(jnp.bfloat16), preferred_element_type=jnp.float32)
    s = (h2 + w3x).astype(jnp.bfloat16)                     # (Cout_p, n_chunk)

    # AvgPool2d(2): per-image pool matrix, block-diagonal across the chunk, applied with
    # static lane slices (no dense (N, Nout) matrix is ever materialized).
    pool = pool_ref[...]
    pooled = [jnp.dot(s[:, b * hw:(b + 1) * hw], pool, preferred_element_type=jnp.float32)
              for b in range(bchunk)]
    out = pooled[0] if bchunk == 1 else jnp.concatenate(pooled, axis=1)
    out_ref[...] = out + b23                                # single lane-dense store


# --------------------------------- Builder / wrapper ----------------------------
def make_optimized_block(params, B, Cin, H, W):
    """Builds device constants once and returns a jitted forward(x_nchw)."""
    w1, b1, w2, b2, w3, b3 = params                 # torch layout, already SN'ed
    Cout = w1.shape[0]
    assert H % 2 == 0 and W % 2 == 0
    Hh, Wh = H // 2, W // 2
    HW, HhWh = H * W, Hh * Wh
    N, Nout = B * HW, B * HhWh
    assert Nout % 128 == 0, "flattened pooled spatial axis must be lane-aligned"

    cin_p, cout_p = _round_up(Cin, 8), _round_up(Cout, 8)

    # Batch-chunk grid axis: smallest chunk whose pooled output stays lane-dense (>=128).
    bchunk = next(c for c in range(1, B + 1) if B % c == 0 and (c * HhWh) % 128 == 0)
    num_chunks = B // bchunk
    n_chunk, nout_chunk = bchunk * HW, bchunk * HhWh

    # ---- constants (built once; live on device via the jit closure) ----
    bf16 = jnp.bfloat16
    w1_p = jnp.pad(w1, ((0, cout_p - Cout), (0, cin_p - Cin), (0, 0), (0, 0)))
    w2_p = jnp.pad(w2, ((0, cout_p - Cout), (0, cout_p - Cout), (0, 0), (0, 0)))
    w1_k = jnp.transpose(w1_p, (0, 2, 3, 1)).reshape(cout_p, 9 * cin_p).astype(bf16)
    w2_k = jnp.transpose(w2_p, (0, 2, 3, 1)).reshape(cout_p, 9 * cout_p).astype(bf16)
    w3_k = jnp.pad(w3[:, :, 0, 0], ((0, cout_p - Cout), (0, cin_p - Cin))).astype(bf16)
    b1_p = jnp.pad(b1, (0, cout_p - Cout))
    b23_p = jnp.pad(b2 + b3, (0, cout_p - Cout))            # conv2/conv3 biases pre-summed
    bias_packed = jnp.concatenate([b1_p, b23_p]).reshape(2 * cout_p, 1).astype(jnp.float32)

    pos = np.arange(HW)
    yy, xx = pos // W, pos % W
    taps = [(ky, kx) for ky in range(3) for kx in range(3)]
    shifts = tuple((ky - 1) * W + (kx - 1) for ky, kx in taps)
    mask_img = np.zeros((9, HW), np.float32)
    for t, (ky, kx) in enumerate(taps):
        ok = ((yy + ky - 1 >= 0) & (yy + ky - 1 < H) &
              (xx + kx - 1 >= 0) & (xx + kx - 1 < W))
        mask_img[t] = ok
    masks = jnp.asarray(np.tile(mask_img, (1, bchunk)), dtype=bf16)     # exact 0/1

    pool_img = np.zeros((HW, HhWh), np.float32)
    pool_img[pos, (yy // 2) * Wh + (xx // 2)] = 0.25
    pool_img = jnp.asarray(pool_img, dtype=bf16)                        # exact 0/0.25

    kernel = functools.partial(_optimized_block_kernel, shifts=shifts,
                               n_chunk=n_chunk, hw=HW, bchunk=bchunk)

    # TODO(synk): for very large spatial sizes replace the per-image pool matmul with
    # roll+add pooling plus a strided lane selection, and mark the constant in_specs with
    # pipeline_mode=pl.Buffered(1) to trim double-buffered VMEM on v7x.
    call = pl.pallas_call(
        kernel,
        out_shape=jax.ShapeDtypeStruct((cout_p, Nout), jnp.float32),
        grid=(num_chunks,),
        in_specs=[
            pl.BlockSpec((cin_p, n_chunk), lambda i: (0, i)),       # x (per chunk)
            pl.BlockSpec((9, n_chunk), lambda i: (0, 0)),           # border masks
            pl.BlockSpec((HW, HhWh), lambda i: (0, 0)),             # per-image pool
            pl.BlockSpec((cout_p, 9 * cin_p), lambda i: (0, 0)),    # w1
            pl.BlockSpec((cout_p, 9 * cout_p), lambda i: (0, 0)),   # w2
            pl.BlockSpec((cout_p, cin_p), lambda i: (0, 0)),        # w3
            pl.BlockSpec((2 * cout_p, 1), lambda i: (0, 0)),        # packed biases
        ],
        out_specs=pl.BlockSpec((cout_p, nout_chunk), lambda i: (0, i)),
        compiler_params=pltpu.CompilerParams(
            dimension_semantics=("parallel",),
            vmem_limit_bytes=32 * 1024 * 1024),
    )

    @jax.jit
    def forward(x_nchw):
        # NCHW -> (Cin_p, B*H*W): batch outermost on the lane axis so chunks are
        # contiguous lane slices.
        x_flat = jnp.transpose(x_nchw, (1, 0, 2, 3)).reshape(Cin, N)
        x_flat = jnp.pad(x_flat, ((0, cin_p - Cin), (0, 0)))
        out_flat = call(x_flat, masks, pool_img, w1_k, w2_k, w3_k, bias_packed)
        out = out_flat[:Cout].reshape(Cout, B, Hh, Wh)
        return jnp.transpose(out, (1, 0, 2, 3))

    return forward


# --------------------------- Parameter construction -----------------------------
def _orthogonal_conv_weight(key, cout, cin, k):
    # nn.init.orthogonal_(gain=1) semantics: (semi-)orthogonal on the (cout, cin*k*k) view.
    w2d = jax.nn.initializers.orthogonal(scale=1.0)(key, (cout, cin * k * k), jnp.float32)
    return w2d.reshape(cout, cin, k, k)


def _spectral_normalize(w):
    # TODO(synk): torch.nn.utils.spectral_norm uses a 1-step power iteration with a
    # persistent random u; here we divide by the exact top singular value (its fixed
    # point).  At orthogonal init sigma == 1 so the two coincide.
    mat = w.reshape(w.shape[0], -1)
    sigma = jnp.linalg.svd(mat, compute_uv=False)[0]
    return w / sigma


def make_params(key, in_channels, out_channels):
    k1, k2, k3, kb = jax.random.split(key, 4)
    w1 = _spectral_normalize(_orthogonal_conv_weight(k1, out_channels, in_channels, 3))
    w2 = _spectral_normalize(_orthogonal_conv_weight(k2, out_channels, out_channels, 3))
    w3 = _spectral_normalize(_orthogonal_conv_weight(k3, out_channels, in_channels, 1))
    # init_weight zeroes the conv biases in torch; small nonzero values are used here so
    # the bias plumbing is actually exercised by the check below.
    kb1, kb2, kb3 = jax.random.split(kb, 3)
    b1 = 0.1 * jax.random.normal(kb1, (out_channels,), jnp.float32)
    b2 = 0.1 * jax.random.normal(kb2, (out_channels,), jnp.float32)
    b3 = 0.1 * jax.random.normal(kb3, (out_channels,), jnp.float32)
    return (w1, b1, w2, b2, w3, b3)


# ----------------------------- Pure-JAX reference --------------------------------
def _ref_forward(x, params):
    w1, b1, w2, b2, w3, b3 = params

    def conv(t, w, b, pad):
        y = lax.conv_general_dilated(
            t, w, window_strides=(1, 1), padding=[(pad, pad), (pad, pad)],
            dimension_numbers=("NCHW", "OIHW", "NCHW"))
        return y + b[None, :, None, None]

    def avgpool2(t):
        B, C, H, W = t.shape
        return t.reshape(B, C, H // 2, 2, W // 2, 2).mean(axis=(3, 5))

    h = jnp.maximum(conv(x, w1, b1, 1), 0.0)
    main = avgpool2(conv(h, w2, b2, 1))
    byp = conv(avgpool2(x), w3, b3, 0)
    return main + byp


# ------------------------------------ Main ---------------------------------------
if __name__ == "__main__":
    B, Cin, Cout, H, W = 2, 4, 8, 16, 16
    key = jax.random.PRNGKey(0)
    kx, kp = jax.random.split(key)

    x = jax.random.normal(kx, (B, Cin, H, W), jnp.float32)
    params = make_params(kp, Cin, Cout)

    forward = make_optimized_block(params, B, Cin, H, W)
    out = jax.block_until_ready(forward(x))
    ref = jax.block_until_ready(_ref_forward(x, params))

    assert out.shape == (B, Cout, H // 2, W // 2), out.shape
    # bf16 MXU operands with f32 accumulation: loosened tolerance vs. the pure-f32 path.
    assert jnp.allclose(out, ref, atol=5e-2, rtol=5e-2), (
        float(jnp.max(jnp.abs(out - ref))))

    print("KERNEL_OK")
</pallas_src>

<mosaic_0001>
module attributes {stable_mosaic.version = 11 : i64} {
  func.func @_optimized_block_kernel(%arg0: i32, %arg1: memref<8x512xf32, #tpu.memory_space<vmem>>, %arg2: memref<9x512xbf16, #tpu.memory_space<vmem>>, %arg3: memref<256x64xbf16, #tpu.memory_space<vmem>>, %arg4: memref<8x72xbf16, #tpu.memory_space<vmem>>, %arg5: memref<8x72xbf16, #tpu.memory_space<vmem>>, %arg6: memref<8x8xbf16, #tpu.memory_space<vmem>>, %arg7: memref<16x1xf32, #tpu.memory_space<vmem>>, %arg8: memref<8x128xf32, #tpu.memory_space<vmem>>) attributes {dimension_semantics = [#tpu.dimension_semantics<parallel>], iteration_bounds = array<i64: 1>, scalar_prefetch = 0 : i64, scratch_operands = 0 : i64, tpu.core_type = #tpu.core_type<tc>, window_params = [{transform_indices = @transform_0, window_bounds = array<i64: 8, 512>}, {pipeline_mode = #tpu.pipeline_mode<synchronous>, transform_indices = @transform_1, window_bounds = array<i64: 9, 512>}, {pipeline_mode = #tpu.pipeline_mode<synchronous>, transform_indices = @transform_2, window_bounds = array<i64: 256, 64>}, {pipeline_mode = #tpu.pipeline_mode<synchronous>, transform_indices = @transform_3, window_bounds = array<i64: 8, 72>}, {pipeline_mode = #tpu.pipeline_mode<synchronous>, transform_indices = @transform_4, window_bounds = array<i64: 8, 72>}, {pipeline_mode = #tpu.pipeline_mode<synchronous>, transform_indices = @transform_5, window_bounds = array<i64: 8, 8>}, {pipeline_mode = #tpu.pipeline_mode<synchronous>, transform_indices = @transform_6, window_bounds = array<i64: 16, 1>}, {transform_indices = @transform_7, window_bounds = array<i64: 8, 128>}]} {
    %c0 = arith.constant 0 : index
    %c0_0 = arith.constant 0 : index
    %0 = vector.load %arg1[%c0, %c0_0] : memref<8x512xf32, #tpu.memory_space<vmem>>, vector<8x512xf32>
    %c0_1 = arith.constant 0 : index
    %c0_2 = arith.constant 0 : index
    %1 = vector.load %arg7[%c0_1, %c0_2] : memref<16x1xf32, #tpu.memory_space<vmem>>, vector<8x1xf32>
    %c8 = arith.constant 8 : index
    %c0_3 = arith.constant 0 : index
    %2 = vector.load %arg7[%c8, %c0_3] : memref<16x1xf32, #tpu.memory_space<vmem>>, vector<8x1xf32>
    %c0_4 = arith.constant 0 : index
    %c0_5 = arith.constant 0 : index
    %3 = vector.load %arg4[%c0_4, %c0_5] : memref<8x72xbf16, #tpu.memory_space<vmem>>, vector<8x72xbf16>
    %c17_i32 = arith.constant 17 : i32
    %4 = tpu.dynamic_rotate %0 by %c17_i32 dim 1 : vector<8x512xf32>, i32 -> vector<8x512xf32>
    %c0_6 = arith.constant 0 : index
    %c0_7 = arith.constant 0 : index
    %5 = vector.load %arg2[%c0_6, %c0_7] : memref<9x512xbf16, #tpu.memory_space<vmem>>, vector<1x512xbf16>
    %6 = arith.extf %5 : vector<1x512xbf16> to vector<1x512xf32>
    %7 = vector.broadcast %6 : vector<1x512xf32> to vector<8x512xf32>
    %8 = arith.mulf %4, %7 : vector<8x512xf32>
    %c16_i32 = arith.constant 16 : i32
    %9 = tpu.dynamic_rotate %0 by %c16_i32 dim 1 : vector<8x512xf32>, i32 -> vector<8x512xf32>
    %c1 = arith.constant 1 : index
    %c0_8 = arith.constant 0 : index
    %10 = vector.load %arg2[%c1, %c0_8] : memref<9x512xbf16, #tpu.memory_space<vmem>>, vector<1x512xbf16>
    %11 = arith.extf %10 : vector<1x512xbf16> to vector<1x512xf32>
    %12 = vector.broadcast %11 : vector<1x512xf32> to vector<8x512xf32>
    %13 = arith.mulf %9, %12 : vector<8x512xf32>
    %c15_i32 = arith.constant 15 : i32
    %14 = tpu.dynamic_rotate %0 by %c15_i32 dim 1 : vector<8x512xf32>, i32 -> vector<8x512xf32>
    %c2 = arith.constant 2 : index
    %c0_9 = arith.constant 0 : index
    %15 = vector.load %arg2[%c2, %c0_9] : memref<9x512xbf16, #tpu.memory_space<vmem>>, vector<1x512xbf16>
    %16 = arith.extf %15 : vector<1x512xbf16> to vector<1x512xf32>
    %17 = vector.broadcast %16 : vector<1x512xf32> to vector<8x512xf32>
    %18 = arith.mulf %14, %17 : vector<8x512xf32>
    %c1_i32 = arith.constant 1 : i32
    %19 = tpu.dynamic_rotate %0 by %c1_i32 dim 1 : vector<8x512xf32>, i32 -> vector<8x512xf32>
    %c3 = arith.constant 3 : index
    %c0_10 = arith.constant 0 : index
    %20 = vector.load %arg2[%c3, %c0_10] : memref<9x512xbf16, #tpu.memory_space<vmem>>, vector<1x512xbf16>
    %21 = arith.extf %20 : vector<1x512xbf16> to vector<1x512xf32>
    %22 = vector.broadcast %21 : vector<1x512xf32> to vector<8x512xf32>
    %23 = arith.mulf %19, %22 : vector<8x512xf32>
    %c511_i32 = arith.constant 511 : i32
    %24 = tpu.dynamic_rotate %0 by %c511_i32 dim 1 : vector<8x512xf32>, i32 -> vector<8x512xf32>
    %c5 = arith.constant 5 : index
    %c0_11 = arith.constant 0 : index
    %25 = vector.load %arg2[%c5, %c0_11] : memref<9x512xbf16, #tpu.memory_space<vmem>>, vector<1x512xbf16>
    %26 = arith.extf %25 : vector<1x512xbf16> to vector<1x512xf32>
    %27 = vector.broadcast %26 : vector<1x512xf32> to vector<8x512xf32>
    %28 = arith.mulf %24, %27 : vector<8x512xf32>
    %c497_i32 = arith.constant 497 : i32
    %29 = tpu.dynamic_rotate %0 by %c497_i32 dim 1 : vector<8x512xf32>, i32 -> vector<8x512xf32>
    %c6 = arith.constant 6 : index
    %c0_12 = arith.constant 0 : index
    %30 = vector.load %arg2[%c6, %c0_12] : memref<9x512xbf16, #tpu.memory_space<vmem>>, vector<1x512xbf16>
    %31 = arith.extf %30 : vector<1x512xbf16> to vector<1x512xf32>
    %32 = vector.broadcast %31 : vector<1x512xf32> to vector<8x512xf32>
    %33 = arith.mulf %29, %32 : vector<8x512xf32>
    %c496_i32 = arith.constant 496 : i32
    %34 = tpu.dynamic_rotate %0 by %c496_i32 dim 1 : vector<8x512xf32>, i32 -> vector<8x512xf32>
    %c7 = arith.constant 7 : index
    %c0_13 = arith.constant 0 : index
    %35 = vector.load %arg2[%c7, %c0_13] : memref<9x512xbf16, #tpu.memory_space<vmem>>, vector<1x512xbf16>
    %36 = arith.extf %35 : vector<1x512xbf16> to vector<1x512xf32>
    %37 = vector.broadcast %36 : vector<1x512xf32> to vector<8x512xf32>
    %38 = arith.mulf %34, %37 : vector<8x512xf32>
    %c495_i32 = arith.constant 495 : i32
    %39 = tpu.dynamic_rotate %0 by %c495_i32 dim 1 : vector<8x512xf32>, i32 -> vector<8x512xf32>
    %c8_14 = arith.constant 8 : index
    %c0_15 = arith.constant 0 : index
    %40 = vector.load %arg2[%c8_14, %c0_15] : memref<9x512xbf16, #tpu.memory_space<vmem>>, vector<1x512xbf16>
    %41 = arith.extf %40 : vector<1x512xbf16> to vector<1x512xf32>
    %42 = vector.broadcast %41 : vector<1x512xf32> to vector<8x512xf32>
    %43 = arith.mulf %39, %42 : vector<8x512xf32>
    %44 = tpu.concatenate %8, %13, %18, %23, %0, %28, %33, %38, %43 in 0 : vector<8x512xf32>, vector<8x512xf32>, vector<8x512xf32>, vector<8x512xf32>, vector<8x512xf32>, vector<8x512xf32>, vector<8x512xf32>, vector<8x512xf32>, vector<8x512xf32> -> vector<72x512xf32>
    %45 = arith.truncf %44 : vector<72x512xf32> to vector<72x512xbf16>
    %cst = arith.constant dense<0.000000e+00> : vector<8x512xf32>
    %46 = tpu.matmul %3, %45, %cst {dimension_numbers = #tpu.dot_dimension_numbers<[1], [0], [0], [1], [0, 0, 1, 1], [], []>} : vector<8x72xbf16>, vector<72x512xbf16>, vector<8x512xf32> -> vector<8x512xf32>
    %47 = vector.broadcast %1 : vector<8x1xf32> to vector<8x512xf32>
    %48 = arith.addf %46, %47 : vector<8x512xf32>
    %cst_16 = arith.constant 0.000000e+00 : f32
    %49 = vector.broadcast %cst_16 : f32 to vector<8x512xf32>
    %50 = arith.maximumf %48, %49 : vector<8x512xf32>
    %c0_17 = arith.constant 0 : index
    %c0_18 = arith.constant 0 : index
    %51 = vector.load %arg5[%c0_17, %c0_18] : memref<8x72xbf16, #tpu.memory_space<vmem>>, vector<8x72xbf16>
    %c17_i32_19 = arith.constant 17 : i32
    %52 = tpu.dynamic_rotate %50 by %c17_i32_19 dim 1 : vector<8x512xf32>, i32 -> vector<8x512xf32>
    %c0_20 = arith.constant 0 : index
    %c0_21 = arith.constant 0 : index
    %53 = vector.load %arg2[%c0_20, %c0_21] : memref<9x512xbf16, #tpu.memory_space<vmem>>, vector<1x512xbf16>
    %54 = arith.extf %53 : vector<1x512xbf16> to vector<1x512xf32>
    %55 = vector.broadcast %54 : vector<1x512xf32> to vector<8x512xf32>
    %56 = arith.mulf %52, %55 : vector<8x512xf32>
    %c16_i32_22 = arith.constant 16 : i32
    %57 = tpu.dynamic_rotate %50 by %c16_i32_22 dim 1 : vector<8x512xf32>, i32 -> vector<8x512xf32>
    %c1_23 = arith.constant 1 : index
    %c0_24 = arith.constant 0 : index
    %58 = vector.load %arg2[%c1_23, %c0_24] : memref<9x512xbf16, #tpu.memory_space<vmem>>, vector<1x512xbf16>
    %59 = arith.extf %58 : vector<1x512xbf16> to vector<1x512xf32>
    %60 = vector.broadcast %59 : vector<1x512xf32> to vector<8x512xf32>
    %61 = arith.mulf %57, %60 : vector<8x512xf32>
    %c15_i32_25 = arith.constant 15 : i32
    %62 = tpu.dynamic_rotate %50 by %c15_i32_25 dim 1 : vector<8x512xf32>, i32 -> vector<8x512xf32>
    %c2_26 = arith.constant 2 : index
    %c0_27 = arith.constant 0 : index
    %63 = vector.load %arg2[%c2_26, %c0_27] : memref<9x512xbf16, #tpu.memory_space<vmem>>, vector<1x512xbf16>
    %64 = arith.extf %63 : vector<1x512xbf16> to vector<1x512xf32>
    %65 = vector.broadcast %64 : vector<1x512xf32> to vector<8x512xf32>
    %66 = arith.mulf %62, %65 : vector<8x512xf32>
    %c1_i32_28 = arith.constant 1 : i32
    %67 = tpu.dynamic_rotate %50 by %c1_i32_28 dim 1 : vector<8x512xf32>, i32 -> vector<8x512xf32>
    %c3_29 = arith.constant 3 : index
    %c0_30 = arith.constant 0 : index
    %68 = vector.load %arg2[%c3_29, %c0_30] : memref<9x512xbf16, #tpu.memory_space<vmem>>, vector<1x512xbf16>
    %69 = arith.extf %68 : vector<1x512xbf16> to vector<1x512xf32>
    %70 = vector.broadcast %69 : vector<1x512xf32> to vector<8x512xf32>
    %71 = arith.mulf %67, %70 : vector<8x512xf32>
    %c511_i32_31 = arith.constant 511 : i32
    %72 = tpu.dynamic_rotate %50 by %c511_i32_31 dim 1 : vector<8x512xf32>, i32 -> vector<8x512xf32>
    %c5_32 = arith.constant 5 : index
    %c0_33 = arith.constant 0 : index
    %73 = vector.load %arg2[%c5_32, %c0_33] : memref<9x512xbf16, #tpu.memory_space<vmem>>, vector<1x512xbf16>
    %74 = arith.extf %73 : vector<1x512xbf16> to vector<1x512xf32>
    %75 = vector.broadcast %74 : vector<1x512xf32> to vector<8x512xf32>
    %76 = arith.mulf %72, %75 : vector<8x512xf32>
    %c497_i32_34 = arith.constant 497 : i32
    %77 = tpu.dynamic_rotate %50 by %c497_i32_34 dim 1 : vector<8x512xf32>, i32 -> vector<8x512xf32>
    %c6_35 = arith.constant 6 : index
    %c0_36 = arith.constant 0 : index
    %78 = vector.load %arg2[%c6_35, %c0_36] : memref<9x512xbf16, #tpu.memory_space<vmem>>, vector<1x512xbf16>
    %79 = arith.extf %78 : vector<1x512xbf16> to vector<1x512xf32>
    %80 = vector.broadcast %79 : vector<1x512xf32> to vector<8x512xf32>
    %81 = arith.mulf %77, %80 : vector<8x512xf32>
    %c496_i32_37 = arith.constant 496 : i32
    %82 = tpu.dynamic_rotate %50 by %c496_i32_37 dim 1 : vector<8x512xf32>, i32 -> vector<8x512xf32>
    %c7_38 = arith.constant 7 : index
    %c0_39 = arith.constant 0 : index
    %83 = vector.load %arg2[%c7_38, %c0_39] : memref<9x512xbf16, #tpu.memory_space<vmem>>, vector<1x512xbf16>
    %84 = arith.extf %83 : vector<1x512xbf16> to vector<1x512xf32>
    %85 = vector.broadcast %84 : vector<1x512xf32> to vector<8x512xf32>
    %86 = arith.mulf %82, %85 : vector<8x512xf32>
    %c495_i32_40 = arith.constant 495 : i32
    %87 = tpu.dynamic_rotate %50 by %c495_i32_40 dim 1 : vector<8x512xf32>, i32 -> vector<8x512xf32>
    %c8_41 = arith.constant 8 : index
    %c0_42 = arith.constant 0 : index
    %88 = vector.load %arg2[%c8_41, %c0_42] : memref<9x512xbf16, #tpu.memory_space<vmem>>, vector<1x512xbf16>
    %89 = arith.extf %88 : vector<1x512xbf16> to vector<1x512xf32>
    %90 = vector.broadcast %89 : vector<1x512xf32> to vector<8x512xf32>
    %91 = arith.mulf %87, %90 : vector<8x512xf32>
    %92 = tpu.concatenate %56, %61, %66, %71, %50, %76, %81, %86, %91 in 0 : vector<8x512xf32>, vector<8x512xf32>, vector<8x512xf32>, vector<8x512xf32>, vector<8x512xf32>, vector<8x512xf32>, vector<8x512xf32>, vector<8x512xf32>, vector<8x512xf32> -> vector<72x512xf32>
    %93 = arith.truncf %92 : vector<72x512xf32> to vector<72x512xbf16>
    %cst_43 = arith.constant dense<0.000000e+00> : vector<8x512xf32>
    %94 = tpu.matmul %51, %93, %cst_43 {dimension_numbers = #tpu.dot_dimension_numbers<[1], [0], [0], [1], [0, 0, 1, 1], [], []>} : vector<8x72xbf16>, vector<72x512xbf16>, vector<8x512xf32> -> vector<8x512xf32>
    %c0_44 = arith.constant 0 : index
    %c0_45 = arith.constant 0 : index
    %95 = vector.load %arg6[%c0_44, %c0_45] : memref<8x8xbf16, #tpu.memory_space<vmem>>, vector<8x8xbf16>
    %96 = arith.truncf %0 : vector<8x512xf32> to vector<8x512xbf16>
    %cst_46 = arith.constant dense<0.000000e+00> : vector<8x512xf32>
    %97 = tpu.matmul %95, %96, %cst_46 {dimension_numbers = #tpu.dot_dimension_numbers<[1], [0], [0], [1], [0, 0, 1, 1], [], []>} : vector<8x8xbf16>, vector<8x512xbf16>, vector<8x512xf32> -> vector<8x512xf32>
    %98 = arith.addf %94, %97 : vector<8x512xf32>
    %99 = arith.truncf %98 : vector<8x512xf32> to vector<8x512xbf16>
    %c0_47 = arith.constant 0 : index
    %c0_48 = arith.constant 0 : index
    %100 = vector.load %arg3[%c0_47, %c0_48] : memref<256x64xbf16, #tpu.memory_space<vmem>>, vector<256x64xbf16>
    %101 = vector.extract_strided_slice %99 {offsets = [0, 0], sizes = [8, 256], strides = [1, 1]} : vector<8x512xbf16> to vector<8x256xbf16>
    %cst_49 = arith.constant dense<0.000000e+00> : vector<8x64xf32>
    %102 = tpu.matmul %101, %100, %cst_49 {dimension_numbers = #tpu.dot_dimension_numbers<[1], [0], [0], [1], [0, 0, 1, 1], [], []>} : vector<8x256xbf16>, vector<256x64xbf16>, vector<8x64xf32> -> vector<8x64xf32>
    %103 = vector.extract_strided_slice %99 {offsets = [0, 256], sizes = [8, 256], strides = [1, 1]} : vector<8x512xbf16> to vector<8x256xbf16>
    %cst_50 = arith.constant dense<0.000000e+00> : vector<8x64xf32>
    %104 = tpu.matmul %103, %100, %cst_50 {dimension_numbers = #tpu.dot_dimension_numbers<[1], [0], [0], [1], [0, 0, 1, 1], [], []>} : vector<8x256xbf16>, vector<256x64xbf16>, vector<8x64xf32> -> vector<8x64xf32>
    %105 = tpu.concatenate %102, %104 in 1 : vector<8x64xf32>, vector<8x64xf32> -> vector<8x128xf32>
    %106 = vector.broadcast %2 : vector<8x1xf32> to vector<8x128xf32>
    %107 = arith.addf %105, %106 : vector<8x128xf32>
    %c0_51 = arith.constant 0 : index
    %c0_52 = arith.constant 0 : index
    %108 = vector.load %arg8[%c0_51, %c0_52] : memref<8x128xf32, #tpu.memory_space<vmem>>, vector<8x128xf32>
    tpu.vector_store %arg8[%c0_51, %c0_52], %107 {strides = array<i32>} : memref<8x128xf32, #tpu.memory_space<vmem>>, vector<8x128xf32>,
    return
  }
  func.func @transform_0(%arg0: i32) -> (i32, i32) {
    %c0_i32 = arith.constant 0 : i32
    %c0_i32_0 = arith.constant 0 : i32
    return %c0_i32, %arg0 : i32, i32
  }
  func.func @transform_1(%arg0: i32) -> (i32, i32) {
    %c0_i32 = arith.constant 0 : i32
    %c0_i32_0 = arith.constant 0 : i32
    %c0_i32_1 = arith.constant 0 : i32
    return %c0_i32, %c0_i32_0 : i32, i32
  }
  func.func @transform_2(%arg0: i32) -> (i32, i32) {
    %c0_i32 = arith.constant 0 : i32
    %c0_i32_0 = arith.constant 0 : i32
    %c0_i32_1 = arith.constant 0 : i32
    return %c0_i32, %c0_i32_0 : i32, i32
  }
  func.func @transform_3(%arg0: i32) -> (i32, i32) {
    %c0_i32 = arith.constant 0 : i32
    %c0_i32_0 = arith.constant 0 : i32
    %c0_i32_1 = arith.constant 0 : i32
    return %c0_i32, %c0_i32_0 : i32, i32
  }
  func.func @transform_4(%arg0: i32) -> (i32, i32) {
    %c0_i32 = arith.constant 0 : i32
    %c0_i32_0 = arith.constant 0 : i32
    %c0_i32_1 = arith.constant 0 : i32
    return %c0_i32, %c0_i32_0 : i32, i32
  }
  func.func @transform_5(%arg0: i32) -> (i32, i32) {
    %c0_i32 = arith.constant 0 : i32
    %c0_i32_0 = arith.constant 0 : i32
    %c0_i32_1 = arith.constant 0 : i32
    return %c0_i32, %c0_i32_0 : i32, i32
  }
  func.func @transform_6(%arg0: i32) -> (i32, i32) {
    %c0_i32 = arith.constant 0 : i32
    %c0_i32_0 = arith.constant 0 : i32
    %c0_i32_1 = arith.constant 0 : i32
    return %c0_i32, %c0_i32_0 : i32, i32
  }
  func.func @transform_7(%arg0: i32) -> (i32, i32) {
    %c0_i32 = arith.constant 0 : i32
    %c0_i32_0 = arith.constant 0 : i32
    return %c0_i32, %arg0 : i32, i32
  }
}

</mosaic_0001>

<bundles_post_ra>
// kernel: forward.1
= control target key start
LH: loop header
LB: loop body
LE: loop exit
PB: predicated region body
PF: predicated region fallthrough
CT: control target
= control target key end

     0   :  { %s938_s30 = smov 111   ;;  %s939_s8 = smov 113   ;;  %v42_v6 = vlaneseq  ;;  %vm263_vm1 = vcmask 1043456   ;;  %vm259_vm9 = vcmask 588800   ;;  %vm486_vm10 = vcmask 64512   ;;  %s1648_s0 = inlined_call_operand.vmem [shape: f32[8,512], index: 0, kind: input, shape index: {}]   ;;  %s1649_s1 = inlined_call_operand.vmem [shape: bf16[9,512], index: 1, kind: input, shape index: {}]   ;;  %s1650_s6 = inlined_call_operand.vmem [shape: f32[16,1], index: 6, kind: input, shape index: {}]   ;;  %s1651_s3 = inlined_call_operand.vmem [shape: bf16[8,72], index: 3, kind: input, shape index: {}]   ;;  %s1652_s5 = inlined_call_operand.vmem [shape: bf16[8,8], index: 5, kind: input, shape index: {}]   ;;  %s1653_s4 = inlined_call_operand.vmem [shape: bf16[8,72], index: 4, kind: input, shape index: {}]   ;;  %s1654_s2 = inlined_call_operand.vmem [shape: bf16[256,64], index: 2, kind: input, shape index: {}]   ;;  %s1655_s7 = inlined_call_operand.vmem [shape: f32[8,128], index: 7, kind: output, shape index: {}]  }
   0x1   :  { %v991_v0 = vld [vmem:[%s1648_s0 + $0x18] sm:$0xff]  ;;  %v996_v1 = vld [vmem:[%s1648_s0 + $0x10] sm:$0xff]  ;;  %v1001_v2 = vld [vmem:[%s1648_s0] sm:$0xff]  ;;  %s940_s9 = smov 112   ;;  %s941_s12 = smov 127   ;;  %vm821_vm11 = vcmask 523264  }
   0x2   :  { %213 = vrot.lane.b32.xlu1 %v991_v0, %s938_s30  ;;  %163 = vrot.lane.b32.xlu2 %v996_v1, %s939_s8  ;;  %v1024_v3 = vld [vmem:[%s1648_s0 + $0x8] sm:$0xff]  ;;  %s942_s0 = smov 15   ;;  %s943_s13 = smov 1   ;;  %v221_v7 = vld [vmem:[%s1649_s1 + $0x18] sm:$0x11]  ;;  %v1077_v8 = vand.u32 127, %v42_v6 }
   0x3   :  { %207 = vrot.lane.b32.xlu0 %v1001_v2, %s938_s30  ;;  %s944_s14 = smov 17   ;;  %s945_s15 = smov 16   ;;  %v225_v9 = vunpack.c.h.bf16 %v221_v7  ;;  %v224_v16 = vunpack.c.l.bf16 %v221_v7  ;;  %v173_v18 = vld [vmem:[%s1649_s1 + $0x8] sm:$0x88]  ;;  %v220_v37 = vld [vmem:[%s1649_s1 + $0x10] sm:$0x11] }
   0x4   :  { %vm215_vm0 = vcmp.lt.s32.totalorder %v1077_v8, 111  ;;  %v176_v24 = vunpack.c.l.bf16 %v173_v18  ;;  %v177_v26 = vunpack.c.h.bf16 %v173_v18  ;;  %vm167_vm2 = vcmp.lt.s32.totalorder %v1077_v8, 113  ;;  %v172_v49 = vld [vmem:[%s1649_s1] sm:$0x88]  ;;  %v146_v55 = vld [vmem:[%s1649_s1 + $0x8] sm:$0x44] }
   0x5   :  { %v1080_v11 = vperm.slane %v225_v9, 0  ;;  %v1089_v20 = vperm.slane %v224_v16, 0  ;;  %vm194_vm3 = vcmp.lt.s32.totalorder %v1077_v8, 112  ;;  %v222_v46 = vunpack.c.l.bf16 %v220_v37 }
   0x6   :  { %v1099_v29 = vperm.slane %v176_v24, 6  ;;  %v1102_v30 = vperm.slane %v176_v24, 7  ;;  %v1107_v32 = vperm.slane %v177_v26, 6  ;;  %v1110_v34 = vperm.slane %v177_v26, 7 }
   0x7   :  { %v223_v47 = vunpack.c.h.bf16 %v220_v37  ;;  %v1129_v51 = vperm.slane %v222_v46, 0  ;;  %v175_v53 = vunpack.c.h.bf16 %v172_v49  ;;  %v174_v56 = vunpack.c.l.bf16 %v172_v49 }
   0x8   :  { %v149_v62 = vunpack.c.l.bf16 %v146_v55  ;;  %v150_v63 = vunpack.c.h.bf16 %v146_v55  ;;  %vm140_vm4 = vcmp.lt.s32.totalorder %v1077_v8, 127  ;;  %vm92_vm5 = vcmp.lt.s32.totalorder %v1077_v8, 15 }
   0x9   :  { %v1131_v52 = vperm.slane %v223_v47, 0  ;;  %v1146_v6 = vperm.slane %v175_v53, 7  ;;  %v1148_v7 = vperm.slane %v174_v56, 7  ;;  %vm119_vm6 = vcmp.lt.s32.totalorder %v1077_v8, 1 }
   0xa   :  { %165 = vrot.lane.b32.xlu2 %v991_v0, %s939_s8  ;;  %159 = vrot.lane.b32.xlu1 %v1001_v2, %s939_s8  ;;  %v1161_v18 = vperm.slane %v149_v62, 5  ;;  %vm44_vm7 = vcmp.lt.s32.totalorder %v1077_v8, 17  ;;  %vm71_vm8 = vcmp.lt.s32.totalorder %v1077_v8, 16  ;;  %v917_v8 = vld [vmem:[%s1654_s2 + $0x38] sm:$0xff] }
   0xb   :  { %211 = vrot.lane.b32.xlu0 %v996_v1, %s938_s30 }
  0x12   :  { %192 = vrot.lane.b32.xlu2 %v991_v0, %s940_s9  ;;  %190 = vrot.lane.b32.xlu1 %v996_v1, %s940_s9 }
  0x13   :  { %186 = vrot.lane.b32.xlu0 %v1001_v2, %s940_s9 }
  0x1a   :  { %136 = vrot.lane.b32.xlu2 %v996_v1, %s941_s12  ;;  %132 = vrot.lane.b32.xlu1 %v1001_v2, %s941_s12 }
  0x1b   :  { %209 = vrot.lane.b32.xlu0 %v1024_v3, %s938_s30 }
  0x22   :  { %188 = vrot.lane.b32.xlu2 %v1024_v3, %s940_s9  ;;  %161 = vrot.lane.b32.xlu1 %v1024_v3, %s939_s8 }
  0x23   :  { %138 = vrot.lane.b32.xlu0 %v991_v0, %s941_s12 }
  0x2a   :  { %90 = vrot.lane.b32.xlu2 %v991_v0, %s942_s0  ;;  %88 = vrot.lane.b32.xlu1 %v996_v1, %s942_s0 }
  0x2b   :  { %86 = vrot.lane.b32.xlu0 %v1024_v3, %s942_s0 }
  0x32   :  { %117 = vrot.lane.b32.xlu2 %v991_v0, %s943_s13  ;;  %115 = vrot.lane.b32.xlu1 %v996_v1, %s943_s13 }
  0x33   :  { %113 = vrot.lane.b32.xlu0 %v1024_v3, %s943_s13 }
  0x3a   :  { %38 = vrot.lane.b32.xlu2 %v996_v1, %s944_s14  ;;  %36 = vrot.lane.b32.xlu1 %v1024_v3, %s944_s14 }
  0x3b   :  { %134 = vrot.lane.b32.xlu0 %v1024_v3, %s941_s12 }
  0x42   :  { %67 = vrot.lane.b32.xlu2 %v996_v1, %s945_s15  ;;  %65 = vrot.lane.b32.xlu1 %v1024_v3, %s945_s15 }
  0x43   :  { %40 = vrot.lane.b32.xlu0 %v991_v0, %s944_s14 }
  0x4a   :  { %111 = vrot.lane.b32.xlu2 %v1001_v2, %s943_s13  ;;  %84 = vrot.lane.b32.xlu1 %v1001_v2, %s942_s0 }
  0x4b   :  { %69 = vrot.lane.b32.xlu0 %v991_v0, %s945_s15 }
  0x52   :  { %63 = vrot.lane.b32.xlu1 %v1001_v2, %s945_s15 }
  0x53   :  { %34 = vrot.lane.b32.xlu0 %v1001_v2, %s944_s14 }
  0x5c   :  { %v1072_v4 = vpop.permute.xlu2 %163 }
  0x64   :  { %v166_v5 = vpop.permute.xlu2 %165 }
  0x65   :  { %v168_v31 = vsel %vm167_vm2, %v1072_v4, %v166_v5 }
  0x66   :  { %v184_v40 = vmul.f32 %v1099_v29, %v168_v31 }
  0x6c   :  { %v193_v10 = vpop.permute.xlu2 %192 }
  0x74   :  { %v214_v12 = vpop.permute.xlu1 %213  ;;  %v1091_v21 = vpop.permute.xlu2 %136 }
  0x75   :  { %v208_v13 = vpop.permute.xlu0 %207 }
  0x76   :  { %v219_v14 = vsel %vm215_vm0, %v214_v12, %v208_v13 }
  0x77   :  { %v233_v15 = vmul.f32 %v1080_v11, %v219_v14 }
  0x79   :  { %v253_v17 = vpack.c.bf16 %v233_v15, %v233_v15  ;;  %v1156_v15 = vperm.slane %v175_v53, 6 }
  0x7b   :  { %v274_v19 = vsel %vm263_vm1, %v253_v17, 0 }
  0x7c   :  { %318 = vmatpush.bf16.msra.mxu3 %v274_v19  ;;  %v1093_v22 = vpop.permute.xlu1 %159  ;;  %v189_v41 = vpop.permute.xlu2 %188  ;;  %v1163_v19 = vperm.slane %v150_v63, 5 }
  0x7d   :  { %v212_v23 = vpop.permute.xlu0 %211  ;;  %v171_v35 = vsel %vm167_vm2, %v166_v5, %v1093_v22 }
  0x7e   :  { %v216_v25 = vsel %vm215_vm0, %v212_v23, %v214_v12  ;;  %v185_v44 = vmul.f32 %v1107_v32, %v171_v35  ;;  %v1150_v12 = vperm.slane %v174_v56, 6 }
  0x7f   :  { %v232_v27 = vmul.f32 %v1089_v20, %v216_v25 }
  0x81   :  { %v252_v28 = vpack.c.bf16 %v232_v27, %v232_v27 }
  0x83   :  { %v271_v33 = vsel %vm263_vm1, %v252_v28, 0 }
  0x84   :  { %305 = vmatpush.bf16.msra.mxu2 %v271_v33  ;;  %v191_v36 = vpop.permute.xlu1 %190  ;;  %v1144_v5 = vpop.permute.xlu2 %90 }
  0x85   :  { %v195_v38 = vsel %vm194_vm3, %v191_v36, %v193_v10  ;;  %v187_v39 = vpop.permute.xlu0 %186  ;;  %v196_v14 = vsel %vm194_vm3, %v189_v41, %v191_v36 }
  0x86   :  { %v205_v42 = vmul.f32 %v1102_v30, %v195_v38  ;;  %v198_v43 = vsel %vm194_vm3, %v193_v10, %v187_v39  ;;  %v204_v24 = vmul.f32 %v1146_v6, %v196_v14 }
  0x87   :  { %v206_v45 = vmul.f32 %v1110_v34, %v198_v43 }
  0x88   :  { %v248_v48 = vpack.c.bf16 %v205_v42, %v184_v40  ;;  %v98_v42 = vld [vmem:[%s1649_s1 + $0x8] sm:$0x22] }
  0x89   :  { %v249_v50 = vpack.c.bf16 %v206_v45, %v185_v44  ;;  %v102_v45 = vunpack.c.h.bf16 %v98_v42  ;;  %v101_v46 = vunpack.c.l.bf16 %v98_v42 }
  0x8a   :  { %306 = vmatpush.bf16.msra.mxu2 %v248_v48 }
  0x8b   :  { %319 = vmatpush.bf16.msra.mxu3 %v249_v50  ;;  %v1193_v47 = vperm.slane %v102_v45, 2  ;;  %v1196_v48 = vperm.slane %v102_v45, 3  ;;  %v1201_v50 = vperm.slane %v101_v46, 2  ;;  %v1203_v53 = vperm.slane %v101_v46, 3 }
  0x8c   :  { %v1133_v54 = vpop.permute.xlu1 %132 }
  0x8d   :  { %v210_v57 = vpop.permute.xlu0 %209 }
  0x8e   :  { %v217_v58 = vsel %vm215_vm0, %v210_v57, %v212_v23  ;;  %v218_v59 = vsel %vm215_vm0, %v208_v13, %v210_v57  ;;  %v197_v13 = vsel %vm194_vm3, %v187_v39, %v189_v41  ;;  %v1185_v41 = vpop.permute.xlu2 %117 }
  0x8f   :  { %v230_v60 = vmul.f32 %v1129_v51, %v218_v59  ;;  %v231_v61 = vmul.f32 %v1131_v52, %v217_v58  ;;  %v203_v25 = vmul.f32 %v1148_v7, %v197_v13  ;;  %v145_v58 = vld [vmem:[%s1649_s1] sm:$0x44] }
  0x90   :  { %v147_v14 = vunpack.c.l.bf16 %v145_v58  ;;  %v148_v13 = vunpack.c.h.bf16 %v145_v58 }
  0x91   :  { %v250_v9 = vpack.c.bf16 %v230_v60, %v230_v60  ;;  %v251_v10 = vpack.c.bf16 %v231_v61, %v231_v61 }
  0x93   :  { %v265_v16 = vsel %vm263_vm1, %v250_v9, 0  ;;  %v268_v17 = vsel %vm263_vm1, %v251_v10, 0 }
  0x94   :  { %279 = vmatpush.bf16.msra.mxu0 %v265_v16  ;;  %292 = vmatpush.bf16.msra.mxu1 %v268_v17  ;;  %v162_v23 = vpop.permute.xlu1 %161 }
  0x95   :  { %v169_v26 = vsel %vm167_vm2, %v162_v23, %v1072_v4  ;;  %v170_v27 = vsel %vm167_vm2, %v1093_v22, %v162_v23  ;;  %v139_v28 = vpop.permute.xlu0 %138  ;;  %v50_v23 = vld [vmem:[%s1649_s1 + $0x8] sm:$0x11] }
  0x96   :  { %v182_v31 = vmul.f32 %v1150_v12, %v170_v27  ;;  %v183_v33 = vmul.f32 %v1156_v15, %v169_v26  ;;  %v141_v35 = vsel %vm140_vm4, %v1091_v21, %v139_v28  ;;  %v144_v36 = vsel %vm140_vm4, %v139_v28, %v1133_v54  ;;  %v1205_v55 = vpop.permute.xlu2 %38 }
  0x97   :  { %v157_v37 = vmul.f32 %v1161_v18, %v141_v35  ;;  %v158_v4 = vmul.f32 %v1163_v19, %v144_v36  ;;  %v31_v36 = vld [vmem:[%s1650_s6] sm:$0xff] }
  0x98   :  { %v246_v38 = vpack.c.bf16 %v203_v25, %v182_v31  ;;  %v247_v39 = vpack.c.bf16 %v204_v24, %v183_v33  ;;  %v1225_v24 = vperm.slane %v147_v14, 5  ;;  %v1227_v25 = vperm.slane %v148_v13, 5 }
  0x99   :  { %v244_v22 = vpack.c.bf16 %v157_v37, %v996_v1  ;;  %v245_v40 = vpack.c.bf16 %v158_v4, %v991_v0  ;;  %v53_v31 = vunpack.c.l.bf16 %v50_v23 }
  0x9a   :  { %280 = vmatpush.bf16.msra.mxu0 %v246_v38  ;;  %293 = vmatpush.bf16.msra.mxu1 %v247_v39  ;;  %v946_v38 = vmov 0  }
  0x9b   :  { %307 = vmatpush.bf16.msra.mxu2 %v244_v22  ;;  %320 = vmatpush.bf16.msra.mxu3 %v245_v40  ;;  %v1248_v22 = vperm.slane %v53_v31, 0  ;;  %v1251_v40 = vperm.slane %v53_v31, 1 }
  0x9c   :  { %v89_v43 = vpop.permute.xlu1 %88  ;;  %936 = vset.pattern.permute.xlu2 %v946_v38  ;;  %937 = vset.pattern.permute.xlu0 %v946_v38 }
  0x9d   :  { %v1190_v44 = vpop.permute.xlu0 %86  ;;  %v93_v49 = vsel %vm92_vm5, %v89_v43, %v1144_v5  ;;  %256 = vperm.xlu2 %936, %v31_v36  }
  0x9e   :  { %v94_v56 = vsel %vm92_vm5, %v1190_v44, %v89_v43  ;;  %v110_v61 = vmul.f32 %v1193_v47, %v93_v49  ;;  %v68_v28 = vpop.permute.xlu2 %67 }
  0x9f   :  { %v109_v9 = vmul.f32 %v1201_v50, %v94_v56 }
  0xa4   :  { %v116_v57 = vpop.permute.xlu1 %115 }
  0xa5   :  { %v120_v59 = vsel %vm119_vm6, %v116_v57, %v1185_v41  ;;  %v114_v60 = vpop.permute.xlu0 %113 }
  0xa6   :  { %v131_v62 = vmul.f32 %v1196_v48, %v120_v59  ;;  %v121_v63 = vsel %vm119_vm6, %v114_v60, %v116_v57  ;;  %v54_v59 = vunpack.c.h.bf16 %v50_v23 }
  0xa7   :  { %v130_v10 = vmul.f32 %v1203_v53, %v121_v63 }
  0xa8   :  { %v241_v16 = vpack.c.bf16 %v131_v62, %v110_v61  ;;  %v112_v61 = vpop.permute.xlu2 %111  ;;  %v1282_v31 = vperm.slane %v54_v59, 1 }
  0xa9   :  { %v240_v17 = vpack.c.bf16 %v130_v10, %v109_v9  ;;  %v49_v10 = vld [vmem:[%s1649_s1] sm:$0x11]  ;;  %v123_v14 = vsel %vm119_vm6, %v1185_v41, %v112_v61  ;;  %v122_v23 = vsel %vm119_vm6, %v112_v61, %v114_v60 }
  0xaa   :  { %321 = vmatpush.bf16.msra.mxu3 %v241_v16  ;;  %v52_v38 = vunpack.c.h.bf16 %v49_v10 }
  0xab   :  { %308 = vmatpush.bf16.msra.mxu2 %v240_v17  ;;  %v33_v17 = vld [vmem:[%s1651_s3] sm:$0xf] }
  0xac   :  { %v1229_v26 = vpop.permute.xlu1 %36 }
  0xad   :  { %v135_v27 = vpop.permute.xlu0 %134  ;;  %v46_v42 = vsel %vm44_vm7, %v1229_v26, %v1205_v55 }
  0xae   :  { %v142_v33 = vsel %vm140_vm4, %v135_v27, %v1091_v21  ;;  %v143_v35 = vsel %vm140_vm4, %v1133_v54, %v135_v27  ;;  %v97_v54 = vld [vmem:[%s1649_s1] sm:$0x22]  ;;  %v61_v57 = vmul.f32 %v1248_v22, %v46_v42  ;;  %v1280_v27 = vperm.slane %v54_v59, 0 }
  0xaf   :  { %v155_v37 = vmul.f32 %v1225_v24, %v143_v35  ;;  %v156_v4 = vmul.f32 %v1227_v25, %v142_v33  ;;  %v99_v45 = vunpack.c.l.bf16 %v97_v54  ;;  %v100_v46 = vunpack.c.h.bf16 %v97_v54 }
  0xb0   :  { %v51_v35 = vunpack.c.l.bf16 %v49_v10  ;;  %v1308_v59 = vperm.slane %v52_v38, 0 }
  0xb1   :  { %v242_v21 = vpack.c.bf16 %v155_v37, %v1001_v2  ;;  %v243_v39 = vpack.c.bf16 %v156_v4, %v1024_v3  ;;  %v1261_v63 = vperm.slane %v99_v45, 3  ;;  %v1263_v9 = vperm.slane %v100_v46, 3 }
  0xb2   :  { %v1271_v13 = vperm.slane %v99_v45, 2  ;;  %v1273_v16 = vperm.slane %v100_v46, 2 }
  0xb3   :  { %281 = vmatpush.bf16.msra.mxu0 %v242_v21  ;;  %294 = vmatpush.bf16.msra.mxu1 %v243_v39  ;;  %v128_v36 = vmul.f32 %v1261_v63, %v123_v14  ;;  %v129_v21 = vmul.f32 %v1263_v9, %v122_v23 }
  0xb4   :  { %v66_v43 = vpop.permute.xlu1 %65 }
  0xb5   :  { %v73_v49 = vsel %vm71_vm8, %v66_v43, %v68_v28  ;;  %v41_v56 = vpop.permute.xlu0 %40 }
  0xb6   :  { %v82_v58 = vmul.f32 %v1251_v40, %v73_v49  ;;  %v45_v41 = vsel %vm44_vm7, %v1205_v55, %v41_v56  ;;  %v1302_v49 = vperm.slane %v51_v35, 1 }
  0xb7   :  { %v62_v42 = vmul.f32 %v1280_v27, %v45_v41 }
  0xb8   :  { %v236_v62 = vpack.c.bf16 %v82_v58, %v61_v57  ;;  %v1304_v57 = vperm.slane %v52_v38, 1  ;;  %v1306_v58 = vperm.slane %v51_v35, 0 }
  0xba   :  { %309 = vmatpush.bf16.msra.mxu2 %v236_v62 }
  0xbc   :  { %v85_v33 = vpop.permute.xlu1 %84 }
  0xbd   :  { %v95_v37 = vsel %vm92_vm5, %v85_v33, %v1190_v44  ;;  %v96_v60 = vsel %vm92_vm5, %v1144_v5, %v85_v33  ;;  %v70_v4 = vpop.permute.xlu0 %69  ;;  %836 = vmatmul.msk.bf16.vlgmr.msra.gmra.mxu2 %vm259_vm9, %v33_v17 }
  0xbe   :  { %v107_v55 = vmul.f32 %v1271_v13, %v96_v60  ;;  %v108_v39 = vmul.f32 %v1273_v16, %v95_v37  ;;  %v72_v54 = vsel %vm71_vm8, %v68_v28, %v70_v4 }
  0xbf   :  { %v83_v44 = vmul.f32 %v1282_v31, %v72_v54 }
  0xc0   :  { %v238_v45 = vpack.c.bf16 %v128_v36, %v107_v55  ;;  %v239_v46 = vpack.c.bf16 %v129_v21, %v108_v39 }
  0xc1   :  { %v237_v5 = vpack.c.bf16 %v83_v44, %v62_v42 }
  0xc2   :  { %282 = vmatpush.bf16.msra.mxu0 %v238_v45  ;;  %295 = vmatpush.bf16.msra.mxu1 %v239_v46 }
  0xc3   :  { %322 = vmatpush.bf16.msra.mxu3 %v237_v5 }
  0xc4   :  { %v64_v61 = vpop.permute.xlu1 %63 }
  0xc5   :  { %v74_v28 = vsel %vm71_vm8, %v64_v61, %v66_v43  ;;  %v75_v62 = vsel %vm71_vm8, %v70_v4, %v64_v61  ;;  %v35_v10 = vpop.permute.xlu0 %34 }
  0xc6   :  { %v80_v14 = vmul.f32 %v1302_v49, %v75_v62  ;;  %v81_v23 = vmul.f32 %v1304_v57, %v74_v28  ;;  %v47_v41 = vsel %vm44_vm7, %v35_v10, %v1229_v26  ;;  %v48_v33 = vsel %vm44_vm7, %v41_v56, %v35_v10  ;;  %837 = vmatmul.msk.bf16.vlgmr.msra.gmra.mxu3 %vm259_vm9, %v33_v17 }
  0xc7   :  { %v59_v35 = vmul.f32 %v1306_v58, %v48_v33  ;;  %v60_v43 = vmul.f32 %v1308_v59, %v47_v41  ;;  %v484_v62 = vpack.c.bf16 %v996_v1, %v996_v1 }
  0xc9   :  { %v234_v36 = vpack.c.bf16 %v80_v14, %v59_v35  ;;  %v235_v37 = vpack.c.bf16 %v81_v23, %v60_v43  ;;  %v497_v10 = vsel %vm263_vm1, %v484_v62, 0  ;;  %v485_v14 = vpack.c.bf16 %v991_v0, %v991_v0 }
  0xca   :  { %535 = vmatpush.bf16.msrb.mxu2 %v497_v10 }
  0xcb   :  { %283 = vmatpush.bf16.msra.mxu0 %v234_v36  ;;  %296 = vmatpush.bf16.msra.mxu1 %v235_v37  ;;  %v500_v23 = vsel %vm263_vm1, %v485_v14, 0 }
  0xcc   :  { %548 = vmatpush.bf16.msrb.mxu3 %v500_v23 }
  0xce   :  { %834 = vmatmul.msk.bf16.vlgmr.msra.gmra.mxu0 %vm259_vm9, %v33_v17  ;;  %835 = vmatmul.msk.bf16.vlgmr.msra.gmra.mxu1 %vm259_vm9, %v33_v17 }
  0xf7   :  { %v257_v60 = vpop.permute.xlu2 %256 }
 0x140   :  { %v311_v4 = vpop.f32.mrf.mxu2 }
 0x141   :  { %v312_v26 = vadd.f32 %v311_v4, %v257_v60 }
 0x143   :  { %v1326_v38 = vmax.f32 %v312_v26, 0.0 }
 0x145   :  { %449 = vrot.lane.b32.xlu1 %v1326_v38, %s938_s30 }
 0x148   :  { %v313_v56 = vpop.f32.mrf.mxu2 }
 0x149   :  { %v324_v21 = vpop.f32.mrf.mxu3 }
 0x14a   :  { %v325_v55 = vadd.f32 %v324_v21, %v257_v60 }
 0x14b   :  { %v285_v39 = vpop.f32.mrf.mxu0  ;;  %v298_v54 = vpop.f32.mrf.mxu1 }
 0x14c   :  { %v1330_v42 = vmax.f32 %v325_v55, 0.0  ;;  %v286_v44 = vadd.f32 %v285_v39, %v257_v60  ;;  %v299_v61 = vadd.f32 %v298_v54, %v257_v60 }
 0x14d   :  { %417 = vrot.lane.b32.xlu1 %v1326_v38, %s939_s8 }
 0x14e   :  { %v1334_v17 = vmax.f32 %v286_v44, 0.0  ;;  %451 = vrot.lane.b32.xlu2 %v1330_v42, %s938_s30  ;;  %v1360_v28 = vmax.f32 %v299_v61, 0.0 }
 0x150   :  { %445 = vrot.lane.b32.xlu0 %v1334_v17, %s938_s30 }
 0x151   :  { %v326_v45 = vpop.f32.mrf.mxu3 }
 0x152   :  { %v481_v45 = vld [vmem:[%s1652_s5] sm:$0xf] }
 0x153   :  { %v287_v46 = vpop.f32.mrf.mxu0  ;;  %v300_v5 = vpop.f32.mrf.mxu1  ;;  %840 = vmatmul.msk.bf16.vlgmr.msrb.gmra.mxu2 %vm486_vm10, %v481_v45  ;;  %841 = vmatmul.msk.bf16.vlgmr.msrb.gmra.mxu3 %vm486_vm10, %v481_v45 }
 0x155   :  { %433 = vrot.lane.b32.xlu1 %v1326_v38, %s940_s9 }
 0x156   :  { %419 = vrot.lane.b32.xlu2 %v1330_v42, %s939_s8 }
 0x158   :  { %413 = vrot.lane.b32.xlu0 %v1334_v17, %s939_s8 }
 0x15d   :  { %401 = vrot.lane.b32.xlu1 %v1326_v38, %s941_s12 }
 0x15e   :  { %435 = vrot.lane.b32.xlu2 %v1330_v42, %s940_s9 }
 0x160   :  { %429 = vrot.lane.b32.xlu0 %v1334_v17, %s940_s9 }
 0x165   :  { %369 = vrot.lane.b32.xlu1 %v1326_v38, %s942_s0 }
 0x166   :  { %403 = vrot.lane.b32.xlu2 %v1330_v42, %s941_s12 }
 0x168   :  { %397 = vrot.lane.b32.xlu0 %v1334_v17, %s941_s12 }
 0x16d   :  { %385 = vrot.lane.b32.xlu1 %v1326_v38, %s943_s13 }
 0x16e   :  { %371 = vrot.lane.b32.xlu2 %v1330_v42, %s942_s0 }
 0x170   :  { %367 = vrot.lane.b32.xlu0 %v1360_v28, %s942_s0 }
 0x175   :  { %337 = vrot.lane.b32.xlu1 %v1326_v38, %s944_s14 }
 0x176   :  { %387 = vrot.lane.b32.xlu2 %v1330_v42, %s943_s13 }
 0x178   :  { %383 = vrot.lane.b32.xlu0 %v1360_v28, %s943_s13 }
 0x17d   :  { %353 = vrot.lane.b32.xlu1 %v1326_v38, %s945_s15 }
 0x17e   :  { %339 = vrot.lane.b32.xlu2 %v1330_v42, %s944_s14 }
 0x180   :  { %335 = vrot.lane.b32.xlu0 %v1360_v28, %s944_s14 }
 0x185   :  { %415 = vrot.lane.b32.xlu1 %v1360_v28, %s939_s8 }
 0x186   :  { %355 = vrot.lane.b32.xlu2 %v1330_v42, %s945_s15 }
 0x188   :  { %351 = vrot.lane.b32.xlu0 %v1360_v28, %s945_s15 }
 0x18d   :  { %365 = vrot.lane.b32.xlu1 %v1334_v17, %s942_s0 }
 0x18e   :  { %431 = vrot.lane.b32.xlu2 %v1360_v28, %s940_s9 }
 0x190   :  { %447 = vrot.lane.b32.xlu0 %v1360_v28, %s938_s30 }
 0x195   :  { %349 = vrot.lane.b32.xlu1 %v1334_v17, %s945_s15 }
 0x196   :  { %381 = vrot.lane.b32.xlu2 %v1334_v17, %s943_s13 }
 0x198   :  { %399 = vrot.lane.b32.xlu0 %v1360_v28, %s941_s12 }
 0x1a0   :  { %333 = vrot.lane.b32.xlu0 %v1334_v17, %s944_s14 }
 0x1a8   :  { %v452_v41 = vpop.permute.xlu2 %451 }
 0x1b0   :  { %v420_v33 = vpop.permute.xlu2 %419 }
 0x1b7   :  { %v1404_v35 = vpop.permute.xlu1 %449 }
 0x1b8   :  { %v453_v1 = vsel %vm215_vm0, %v1404_v35, %v452_v41  ;;  %v436_v43 = vpop.permute.xlu2 %435 }
 0x1b9   :  { %v459_v36 = vmul.f32 %v453_v1, %v1089_v20 }
 0x1bb   :  { %v479_v37 = vpack.c.bf16 %v459_v36, %v459_v36 }
 0x1bd   :  { %v564_v60 = vsel %vm263_vm1, %v479_v37, 0 }
 0x1be   :  { %598 = vmatpush.bf16.msra.mxu2 %v564_v60 }
 0x1bf   :  { %v1411_v4 = vpop.permute.xlu1 %417 }
 0x1c0   :  { %v404_v0 = vpop.permute.xlu2 %403  ;;  %v421_v55 = vsel %vm167_vm2, %v1411_v4, %v420_v33 }
 0x1c2   :  { %v1413_v26 = vpop.permute.xlu0 %445 }
 0x1c3   :  { %v456_v56 = vsel %vm215_vm0, %v452_v41, %v1413_v26 }
 0x1c4   :  { %v460_v21 = vmul.f32 %v456_v56, %v1080_v11  ;;  %v427_v11 = vmul.f32 %v421_v55, %v1099_v29 }
 0x1c6   :  { %v480_v20 = vpack.c.bf16 %v460_v21, %v460_v21 }
 0x1c7   :  { %v1422_v39 = vpop.permute.xlu1 %433 }
 0x1c8   :  { %v437_v54 = vsel %vm194_vm3, %v1422_v39, %v436_v43  ;;  %v567_v44 = vsel %vm263_vm1, %v480_v20, 0  ;;  %v1437_v61 = vpop.permute.xlu2 %371 }
 0x1c9   :  { %v443_v46 = vmul.f32 %v437_v54, %v1102_v30  ;;  %611 = vmatpush.bf16.msra.mxu3 %v567_v44 }
 0x1ca   :  { %v1434_v5 = vpop.permute.xlu0 %413 }
 0x1cb   :  { %v475_v62 = vpack.c.bf16 %v443_v46, %v427_v11  ;;  %v424_v29 = vsel %vm167_vm2, %v420_v33, %v1434_v5  ;;  %v483_v11 = vpack.c.bf16 %v1024_v3, %v1024_v3 }
 0x1cc   :  { %v428_v36 = vmul.f32 %v424_v29, %v1107_v32 }
 0x1cd   :  { %599 = vmatpush.bf16.msra.mxu2 %v475_v62  ;;  %v494_v62 = vsel %vm263_vm1, %v483_v11, 0 }
 0x1ce   :  { %522 = vmatpush.bf16.msrb.mxu1 %v494_v62 }
 0x1cf   :  { %v1439_v10 = vpop.permute.xlu1 %401 }
 0x1d0   :  { %v405_v14 = vsel %vm140_vm4, %v1439_v10, %v404_v0  ;;  %v1456_v60 = vpop.permute.xlu2 %387 }
 0x1d1   :  { %v411_v30 = vmul.f32 %v405_v14, %v1161_v18  ;;  %839 = vmatmul.msk.bf16.vlgmr.msrb.gmra.mxu1 %vm486_vm10, %v481_v45 }
 0x1d2   :  { %v1448_v23 = vpop.permute.xlu0 %429 }
 0x1d3   :  { %v440_v41 = vsel %vm194_vm3, %v436_v43, %v1448_v23  ;;  %v471_v1 = vpack.c.bf16 %v411_v30, %v1326_v38 }
 0x1d4   :  { %v444_v37 = vmul.f32 %v440_v41, %v1110_v34 }
 0x1d5   :  { %600 = vmatpush.bf16.msra.mxu2 %v471_v1 }
 0x1d6   :  { %v476_v56 = vpack.c.bf16 %v444_v37, %v428_v36 }
 0x1d7   :  { %v370_v21 = vpop.permute.xlu1 %369 }
 0x1d8   :  { %612 = vmatpush.bf16.msra.mxu3 %v476_v56  ;;  %v373_v32 = vsel %vm92_vm5, %v370_v21, %v1437_v61  ;;  %v1468_v38 = vpop.permute.xlu2 %339 }
 0x1d9   :  { %v380_v54 = vmul.f32 %v373_v32, %v1193_v47 }
 0x1da   :  { %v1458_v33 = vpop.permute.xlu0 %397 }
 0x1db   :  { %v408_v18 = vsel %vm140_vm4, %v404_v0, %v1458_v33 }
 0x1dc   :  { %v412_v43 = vmul.f32 %v408_v18, %v1163_v19 }
 0x1de   :  { %v472_v34 = vpack.c.bf16 %v412_v43, %v1330_v42  ;;  %v482_v42 = vpack.c.bf16 %v1001_v2, %v1001_v2 }
 0x1df   :  { %v386_v55 = vpop.permute.xlu1 %385 }
 0x1e0   :  { %v389_v20 = vsel %vm119_vm6, %v386_v55, %v1456_v60  ;;  %613 = vmatpush.bf16.msra.mxu3 %v472_v34  ;;  %v491_v14 = vsel %vm263_vm1, %v482_v42, 0  ;;  %v1483_v47 = vpop.permute.xlu2 %355 }
 0x1e1   :  { %v396_v0 = vmul.f32 %v389_v20, %v1196_v48  ;;  %509 = vmatpush.bf16.msrb.mxu0 %v491_v14 }
 0x1e2   :  { %v1475_v44 = vpop.permute.xlu0 %367 }
 0x1e3   :  { %v468_v19 = vpack.c.bf16 %v396_v0, %v380_v54  ;;  %v374_v48 = vsel %vm92_vm5, %v1475_v44, %v370_v21 }
 0x1e4   :  { %838 = vmatmul.msk.bf16.vlgmr.msrb.gmra.mxu0 %vm486_vm10, %v481_v45  ;;  %v379_v2 = vmul.f32 %v374_v48, %v1201_v50 }
 0x1e5   :  { %614 = vmatpush.bf16.msra.mxu3 %v468_v19 }
 0x1e7   :  { %v338_v46 = vpop.permute.xlu1 %337 }
 0x1e8   :  { %v341_v41 = vsel %vm44_vm7, %v338_v46, %v1468_v38  ;;  %v432_v50 = vpop.permute.xlu2 %431 }
 0x1e9   :  { %v348_v56 = vmul.f32 %v341_v41, %v1280_v27  ;;  %v438_v43 = vsel %vm194_vm3, %v432_v50, %v1422_v39 }
 0x1ea   :  { %v1488_v29 = vpop.permute.xlu0 %383 }
 0x1eb   :  { %v390_v3 = vsel %vm119_vm6, %v1488_v29, %v386_v55 }
 0x1ec   :  { %v395_v30 = vmul.f32 %v390_v3, %v1203_v53  ;;  %v1510_v53 = vld [vmem:[%s1653_s4] sm:$0xf] }
 0x1ee   :  { %v467_v1 = vpack.c.bf16 %v395_v30, %v379_v2 }
 0x1ef   :  { %v354_v36 = vpop.permute.xlu1 %353 }
 0x1f0   :  { %v357_v37 = vsel %vm71_vm8, %v354_v36, %v1483_v47  ;;  %601 = vmatpush.bf16.msra.mxu2 %v467_v1 }
 0x1f1   :  { %v364_v21 = vmul.f32 %v357_v37, %v1282_v31  ;;  %v442_v31 = vmul.f32 %v438_v43, %v1146_v6 }
 0x1f2   :  { %v1505_v45 = vpop.permute.xlu0 %335 }
 0x1f3   :  { %v464_v18 = vpack.c.bf16 %v364_v21, %v348_v56  ;;  %v342_v34 = vsel %vm44_vm7, %v1505_v45, %v338_v46 }
 0x1f4   :  { %v347_v0 = vmul.f32 %v342_v34, %v1248_v22  ;;  %v922_v34 = vld [vmem:[%s1654_s2 + $0x60] sm:$0xff] }
 0x1f5   :  { %615 = vmatpush.bf16.msra.mxu3 %v464_v18 }
 0x1f7   :  { %v416_v32 = vpop.permute.xlu1 %415 }
 0x1f8   :  { %v422_v27 = vsel %vm167_vm2, %v416_v32, %v1411_v4  ;;  %845 = vmatmul.msk.bf16.vlgmr.msra.gmra.mxu3 %vm259_vm9, %v1510_v53  ;;  %v423_v22 = vsel %vm167_vm2, %v1434_v5, %v416_v32  ;;  %v382_v5 = vpop.permute.xlu2 %381 }
 0x1f9   :  { %v426_v55 = vmul.f32 %v422_v27, %v1156_v15 }
 0x1fa   :  { %v352_v20 = vpop.permute.xlu0 %351 }
 0x1fb   :  { %v358_v39 = vsel %vm71_vm8, %v352_v20, %v354_v36  ;;  %v474_v54 = vpack.c.bf16 %v442_v31, %v426_v55  ;;  %v914_v31 = vld [vmem:[%s1654_s2 + $0x20] sm:$0xff]  ;;  %v913_v55 = vld [vmem:[%s1654_s2 + $0x18] sm:$0xff] }
 0x1fc   :  { %v363_v4 = vmul.f32 %v358_v39, %v1251_v40  ;;  %v912_v39 = vld [vmem:[%s1654_s2 + $0x10] sm:$0xff] }
 0x1fe   :  { %v463_v19 = vpack.c.bf16 %v363_v4, %v347_v0  ;;  %v911_v0 = vld [vmem:[%s1654_s2 + $0x8] sm:$0xff] }
 0x1ff   :  { %v366_v42 = vpop.permute.xlu1 %365  ;;  %v919_v4 = vld [vmem:[%s1654_s2 + $0x48] sm:$0xff] }
 0x200   :  { %602 = vmatpush.bf16.msra.mxu2 %v463_v19  ;;  %v910_v19 = vld [vmem:[%s1654_s2] sm:$0xff] }
 0x202   :  { %v448_v11 = vpop.permute.xlu0 %447 }
 0x203   :  { %v454_v6 = vsel %vm215_vm0, %v448_v11, %v1404_v35  ;;  %v455_v15 = vsel %vm215_vm0, %v1413_v26, %v448_v11  ;;  %844 = vmatmul.msk.bf16.vlgmr.msra.gmra.mxu2 %vm259_vm9, %v1510_v53  ;;  %v439_v35 = vsel %vm194_vm3, %v1448_v23, %v432_v50  ;;  %v425_v26 = vmul.f32 %v423_v22, %v1150_v12  ;;  %v918_v11 = vld [vmem:[%s1654_s2 + $0x40] sm:$0xff] }
 0x204   :  { %v457_v40 = vmul.f32 %v455_v15, %v1129_v51  ;;  %v458_v46 = vmul.f32 %v454_v6, %v1131_v52  ;;  %v441_v2 = vmul.f32 %v439_v35, %v1148_v7  ;;  %v375_v12 = vsel %vm92_vm5, %v366_v42, %v1475_v44  ;;  %791 = vmatpush.bf16.msrb.mxu2 %v917_v8 }
 0x205   :  { %v376_v7 = vsel %vm92_vm5, %v1437_v61, %v366_v42 }
 0x206   :  { %v477_v62 = vpack.c.bf16 %v457_v40, %v457_v40  ;;  %v478_v14 = vpack.c.bf16 %v458_v46, %v458_v46  ;;  %v473_v30 = vpack.c.bf16 %v441_v2, %v425_v26  ;;  %v377_v61 = vmul.f32 %v376_v7, %v1271_v13  ;;  %v32_v46 = vld [vmem:[%s1650_s6 + $0x8] sm:$0xff] }
 0x207   :  { %v350_v36 = vpop.permute.xlu1 %349  ;;  %825 = vperm.xlu0 %937, %v32_v46  }
 0x208   :  { %v558_v48 = vsel %vm263_vm1, %v477_v62, 0  ;;  %v561_v3 = vsel %vm263_vm1, %v478_v14, 0 }
 0x209   :  { %572 = vmatpush.bf16.msra.mxu0 %v558_v48  ;;  %585 = vmatpush.bf16.msra.mxu1 %v561_v3 }
 0x20a   :  { %v400_v51 = vpop.permute.xlu0 %399 }
 0x20b   :  { %v406_v52 = vsel %vm140_vm4, %v400_v51, %v1439_v10  ;;  %v407_v23 = vsel %vm140_vm4, %v1458_v33, %v400_v51  ;;  %v392_v10 = vsel %vm119_vm6, %v1456_v60, %v382_v5  ;;  %v391_v33 = vsel %vm119_vm6, %v382_v5, %v1488_v29 }
 0x20c   :  { %v409_v41 = vmul.f32 %v407_v23, %v1225_v24  ;;  %v410_v1 = vmul.f32 %v406_v52, %v1227_v25  ;;  %v378_v24 = vmul.f32 %v375_v12, %v1273_v16  ;;  %v393_v25 = vmul.f32 %v392_v10, %v1261_v63 }
 0x20d   :  { %573 = vmatpush.bf16.msra.mxu0 %v473_v30  ;;  %586 = vmatpush.bf16.msra.mxu1 %v474_v54  ;;  %v394_v56 = vmul.f32 %v391_v33, %v1263_v9  ;;  %v359_v60 = vsel %vm71_vm8, %v350_v36, %v352_v20  ;;  %v360_v29 = vsel %vm71_vm8, %v1483_v47, %v350_v36  ;;  %v921_v20 = vld [vmem:[%s1654_s2 + $0x58] sm:$0xff]  ;;  %v920_v54 = vld [vmem:[%s1654_s2 + $0x50] sm:$0xff] }
 0x20e   :  { %v469_v44 = vpack.c.bf16 %v409_v41, %v1334_v17  ;;  %v470_v37 = vpack.c.bf16 %v410_v1, %v1360_v28  ;;  %v465_v16 = vpack.c.bf16 %v393_v25, %v377_v61  ;;  %v361_v28 = vmul.f32 %v360_v29, %v1302_v49  ;;  %v925_v49 = vld [vmem:[%s1654_s2 + $0x78] sm:$0xff] }
 0x20f   :  { %v466_v9 = vpack.c.bf16 %v394_v56, %v378_v24  ;;  %v362_v21 = vmul.f32 %v359_v60, %v1304_v57  ;;  %804 = vmatpush.bf16.msrb.mxu3 %v925_v49  ;;  %v916_v57 = vld [vmem:[%s1654_s2 + $0x30] sm:$0xff] }
 0x210   :  { %792 = vmatpush.bf16.msrb.mxu2 %v916_v57 }
 0x211   :  { %574 = vmatpush.bf16.msra.mxu0 %v469_v44  ;;  %587 = vmatpush.bf16.msra.mxu1 %v470_v37 }
 0x212   :  { %v334_v17 = vpop.permute.xlu0 %333 }
 0x213   :  { %v343_v13 = vsel %vm44_vm7, %v334_v17, %v1505_v45  ;;  %v344_v63 = vsel %vm44_vm7, %v1468_v38, %v334_v17  ;;  %v923_v38 = vld [vmem:[%s1654_s2 + $0x68] sm:$0xff]  ;;  %v537_v45 = vpop.f32.mrf.mxu2 }
 0x214   :  { %v345_v50 = vmul.f32 %v344_v63, %v1306_v58  ;;  %v346_v47 = vmul.f32 %v343_v13, %v1308_v59  ;;  %v924_v58 = vld [vmem:[%s1654_s2 + $0x70] sm:$0xff]  ;;  %v915_v59 = vld [vmem:[%s1654_s2 + $0x28] sm:$0xff]  ;;  %s947_s2 = smov 64  }
 0x215   :  { %575 = vmatpush.bf16.msra.mxu0 %v465_v16  ;;  %588 = vmatpush.bf16.msra.mxu1 %v466_v9 }
 0x216   :  { %v461_v18 = vpack.c.bf16 %v361_v28, %v345_v50  ;;  %v462_v43 = vpack.c.bf16 %v362_v21, %v346_v47  ;;  %805 = vmatpush.bf16.msrb.mxu3 %v924_v58  ;;  %793 = vmatpush.bf16.msrb.mxu2 %v915_v59 }
 0x219   :  { %576 = vmatpush.bf16.msra.mxu0 %v461_v18  ;;  %589 = vmatpush.bf16.msra.mxu1 %v462_v43 }
 0x21a   :  { %806 = vmatpush.bf16.msrb.mxu3 %v923_v38  ;;  %794 = vmatpush.bf16.msrb.mxu2 %v914_v31 }
 0x21b   :  { %v539_v32 = vpop.f32.mrf.mxu2 }
 0x21c   :  { %842 = vmatmul.msk.bf16.vlgmr.msra.gmra.mxu0 %vm259_vm9, %v1510_v53  ;;  %843 = vmatmul.msk.bf16.vlgmr.msra.gmra.mxu1 %vm259_vm9, %v1510_v53  ;;  %v550_v53 = vpop.f32.mrf.mxu3 }
 0x21d   :  { %758 = vmatpush.bf16.msrb.mxu0 %v917_v8  ;;  %771 = vmatpush.bf16.msrb.mxu1 %v925_v49 }
 0x21e   :  { %807 = vmatpush.bf16.msrb.mxu3 %v922_v34  ;;  %795 = vmatpush.bf16.msrb.mxu2 %v913_v55 }
 0x221   :  { %759 = vmatpush.bf16.msrb.mxu0 %v916_v57  ;;  %772 = vmatpush.bf16.msrb.mxu1 %v924_v58 }
 0x222   :  { %808 = vmatpush.bf16.msrb.mxu3 %v921_v20  ;;  %796 = vmatpush.bf16.msrb.mxu2 %v912_v39 }
 0x224   :  { %v552_v27 = vpop.f32.mrf.mxu3 }
 0x225   :  { %760 = vmatpush.bf16.msrb.mxu0 %v915_v59  ;;  %773 = vmatpush.bf16.msrb.mxu1 %v923_v38 }
 0x226   :  { %809 = vmatpush.bf16.msrb.mxu3 %v920_v54  ;;  %797 = vmatpush.bf16.msrb.mxu2 %v911_v0 }
 0x229   :  { %761 = vmatpush.bf16.msrb.mxu0 %v914_v31  ;;  %774 = vmatpush.bf16.msrb.mxu1 %v922_v34 }
 0x22a   :  { %810 = vmatpush.bf16.msrb.mxu3 %v919_v4  ;;  %798 = vmatpush.bf16.msrb.mxu2 %v910_v19 }
 0x22d   :  { %762 = vmatpush.bf16.msrb.mxu0 %v913_v55  ;;  %775 = vmatpush.bf16.msrb.mxu1 %v921_v20 }
 0x22e   :  { %811 = vmatpush.bf16.msrb.mxu3 %v918_v11 }
 0x231   :  { %763 = vmatpush.bf16.msrb.mxu0 %v912_v39  ;;  %776 = vmatpush.bf16.msrb.mxu1 %v920_v54 }
 0x235   :  { %764 = vmatpush.bf16.msrb.mxu0 %v911_v0  ;;  %777 = vmatpush.bf16.msrb.mxu1 %v919_v4 }
 0x239   :  { %765 = vmatpush.bf16.msrb.mxu0 %v910_v19  ;;  %778 = vmatpush.bf16.msrb.mxu1 %v918_v11 }
 0x24e   :  { %v524_v15 = vpop.f32.mrf.mxu1 }
 0x256   :  { %v526_v42 = vpop.f32.mrf.mxu1 }
 0x261   :  { %v511_v6 = vpop.f32.mrf.mxu0 }
 0x269   :  { %v513_v22 = vpop.f32.mrf.mxu0 }
 0x279   :  { %v826_v9 = vpop.permute.xlu0 %825 }
 0x27b   :  { %v617_v40 = vpop.f32.mrf.mxu3 }
 0x27c   :  { %v618_v14 = vadd.f32 %v617_v40, %v550_v53 }
 0x283   :  { %v619_v35 = vpop.f32.mrf.mxu3 }
 0x286   :  { %v604_v62 = vpop.f32.mrf.mxu2 }
 0x287   :  { %v605_v26 = vadd.f32 %v604_v62, %v537_v45 }
 0x289   :  { %v622_v48 = vpack.c.bf16 %v618_v14, %v605_v26 }
 0x28b   :  { %v785_v3 = vunpack.c.l.b16 %v622_v48  ;;  %v786_v2 = vunpack.c.h.b16 %v622_v48 }
 0x28d   :  { %v787_v5 = vpack.c.b16 %v785_v3, %v785_v3  ;;  %v788_v51 = vpack.c.b16 %v786_v2, %v786_v2 }
 0x28e   :  { %v606_v52 = vpop.f32.mrf.mxu2 }
 0x28f   :  { %799 = vmatmul.bf16.vlgmr.msrb.gmra.mxu2 %v787_v5  ;;  %812 = vmatmul.bf16.vlgmr.msrb.gmra.mxu3 %v788_v51 }
 0x299   :  { %v578_v23 = vpop.f32.mrf.mxu0  ;;  %v591_v30 = vpop.f32.mrf.mxu1 }
 0x29a   :  { %v579_v12 = vadd.f32 %v578_v23, %v511_v6  ;;  %v592_v7 = vadd.f32 %v591_v30, %v524_v15 }
 0x29c   :  { %v621_v41 = vpack.c.bf16 %v592_v7, %v579_v12 }
 0x29e   :  { %v656_v1 = vunpack.c.l.b16 %v621_v41  ;;  %v657_v10 = vunpack.c.h.b16 %v621_v41 }
 0x2a0   :  { %v658_v33 = vpack.c.b16 %v656_v1, %v656_v1  ;;  %v659_v36 = vpack.c.b16 %v657_v10, %v657_v10 }
 0x2a1   :  { %v580_v44 = vpop.f32.mrf.mxu0  ;;  %v593_v37 = vpop.f32.mrf.mxu1 }
 0x2a2   :  { %766 = vmatmul.bf16.vlgmr.msrb.gmra.mxu0 %v658_v33  ;;  %779 = vmatmul.bf16.vlgmr.msrb.gmra.mxu1 %v659_v36 }
 0x312   :  { %v800_v61 = vpop.f32.mrf.mxu2  ;;  %v813_v24 = vpop.f32.mrf.mxu3 }
 0x313   :  { %v814_v25 = vadd.f32 %v813_v24, %v800_v61 }
 0x315   :  { %818 = vrot.lane.b32.xlu2 %v814_v25, %s947_s2 }
 0x31a   :  { %v802_v56 = vpop.f32.mrf.mxu2  ;;  %v815_v60 = vpop.f32.mrf.mxu3 }
 0x31f   :  { %v767_v29 = vpop.f32.mrf.mxu0  ;;  %v780_v17 = vpop.f32.mrf.mxu1 }
 0x320   :  { %v781_v13 = vadd.f32 %v780_v17, %v767_v29 }
 0x327   :  { %v769_v63 = vpop.f32.mrf.mxu0  ;;  %v782_v16 = vpop.f32.mrf.mxu1 }
 0x36f   :  { %v819_v28 = vpop.permute.xlu2 %818 }
 0x370   :  { %v822_v21 = vsel %vm821_vm11, %v781_v13, %v819_v28 }
 0x371   :  { %v828_v50 = vadd.f32 %v826_v9, %v822_v21 }
 0x373   :  { %829 = vst [vmem:[%s1655_s7] sm:$0xff] %v828_v50 }

</bundles_post_ra>
